<compile_context>
chip_gen: v6e
topology: v6e:2x2x1
jax: 0.10.0
libtpu: 0.0.40
codegen_flags: <defaults>
</compile_context>

<pallas_src>
import math
import functools

import jax
import jax.numpy as jnp
from jax.experimental import pallas as pl
from jax.experimental.pallas import tpu as pltpu


def _layernorm(x, w, b, eps=1e-5):
    # x: (T, D) f32, w/b: (1, D) f32
    mu = jnp.mean(x, axis=-1, keepdims=True)
    xc = x - mu
    var = jnp.mean(xc * xc, axis=-1, keepdims=True)
    return xc * jax.lax.rsqrt(var + eps) * w + b


def encoder_layer_kernel(
    xq_ref,     # (1, Tq, D)  query-row block of the input (compute dtype)
    x_ref,      # (1, S, D)   full input row window (for K/V projection)
    wq_ref,     # (D, D)      q projection, pre-transposed
    bq_ref,     # (1, D)      f32
    wkv_ref,    # (D, 2D)     k,v projection, pre-transposed
    bkv_ref,    # (1, 2D)     f32
    wo_ref,     # (D, D)      out_proj.weight, pre-transposed
    bo_ref,     # (1, D)      f32
    ln1w_ref,   # (1, D)      f32
    ln1b_ref,   # (1, D)      f32
    w1_ref,     # (D, F)      linear1.weight, pre-transposed
    b1_ref,     # (1, F)      f32
    w2_ref,     # (F, D)      linear2.weight, pre-transposed
    b2_ref,     # (1, D)      f32
    ln2w_ref,   # (1, D)      f32
    ln2b_ref,   # (1, D)      f32
    out_ref,    # (1, Tq, D)  output block
    heads_ref,  # VMEM scratch (Tq, D) compute dtype -- concat of head outputs
    *,
    nhead: int,
):
    xq = xq_ref[0]                     # (Tq, D)
    x_full = x_ref[0]                  # (S, D)
    Tq, D = xq.shape
    dh = D // nhead
    scale = 1.0 / math.sqrt(dh)
    cd = xq.dtype                      # compute dtype (f32 or bf16)

    # --- projections: single full-depth matmuls, weights already transposed ---
    q = jnp.dot(xq, wq_ref[...], preferred_element_type=jnp.float32) + bq_ref[...]
    kv = jnp.dot(x_full, wkv_ref[...], preferred_element_type=jnp.float32) + bkv_ref[...]
    q = (q * scale).astype(cd)         # (Tq, D)
    k = kv[:, :D].astype(cd)           # (S, D)
    v = kv[:, D:].astype(cd)           # (S, D)

    # --- multi-head attention: heads written into one lane-contiguous buffer ---
    for h in range(nhead):
        lo, hi = h * dh, (h + 1) * dh
        qh = q[:, lo:hi]               # (Tq, dh)
        kh = k[:, lo:hi]               # (S, dh)
        vh = v[:, lo:hi]               # (S, dh)
        # contract on last axes of both operands -> no explicit kh.T
        s = jax.lax.dot_general(
            qh, kh, (((1,), (1,)), ((), ())),
            preferred_element_type=jnp.float32)            # (Tq, S)
        m = jnp.max(s, axis=-1, keepdims=True)
        p = jnp.exp(s - m)
        l = jnp.sum(p, axis=-1, keepdims=True)             # (Tq, 1)
        pv = jnp.dot(p.astype(cd), vh,
                     preferred_element_type=jnp.float32)   # (Tq, dh)
        # fold 1/l into the small (Tq, dh) result; reciprocal runs on the EUP.
        heads_ref[:, lo:hi] = (pv * pl.reciprocal(l, approx=True)).astype(cd)

    # single full-K output projection: concat(heads) @ Wo^T
    attn = jnp.dot(heads_ref[...], wo_ref[...],
                   preferred_element_type=jnp.float32) + bo_ref[...]

    # --- residual + layernorm 1 (f32) ---
    y = _layernorm(xq.astype(jnp.float32) + attn, ln1w_ref[...], ln1b_ref[...])

    # --- feed-forward ---
    h1 = jnp.dot(y.astype(cd), w1_ref[...],
                 preferred_element_type=jnp.float32) + b1_ref[...]
    h1 = jnp.maximum(h1, 0.0)                               # ReLU
    h2 = jnp.dot(h1.astype(cd), w2_ref[...],
                 preferred_element_type=jnp.float32) + b2_ref[...]

    # --- residual + layernorm 2 (f32) ---
    out = _layernorm(y + h2, ln2w_ref[...], ln2b_ref[...])
    out_ref[0] = out.astype(out_ref.dtype)


def transformer_encoder_layer(src, params, *, nhead, block_q=None,
                              compute_dtype=None):
    """src: (B, S, D).  params: torch-layout weights (see __main__)."""
    B, S, D = src.shape
    F = params["w1"].shape[0]
    out_dtype = src.dtype
    cd = compute_dtype if compute_dtype is not None else src.dtype

    # Query-block size: multiple of 8 (or full S) -> valid TPU block shape.
    if block_q is None:
        block_q = 128 if (S % 128 == 0) else S
    nqb = S // block_q

    # ---- one-time host-side layout fixes (free at XLA level) -----------------
    wqkv = params["wqkv"]                          # (3D, D) torch layout
    wq_t = jnp.transpose(wqkv[:D]).astype(cd)      # (D, D)
    wkv_t = jnp.transpose(wqkv[D:]).astype(cd)     # (D, 2D)
    bq = params["bqkv"][:, :D].astype(jnp.float32)
    bkv = params["bqkv"][:, D:].astype(jnp.float32)
    wo_t = jnp.transpose(params["wo"]).astype(cd)  # (D, D)
    bo = params["bo"].astype(jnp.float32)
    w1_t = jnp.transpose(params["w1"]).astype(cd)  # (D, F)
    b1 = params["b1"].astype(jnp.float32)
    w2_t = jnp.transpose(params["w2"]).astype(cd)  # (F, D)
    b2 = params["b2"].astype(jnp.float32)
    ln1w = params["ln1_w"].astype(jnp.float32)
    ln1b = params["ln1_b"].astype(jnp.float32)
    ln2w = params["ln2_w"].astype(jnp.float32)
    ln2b = params["ln2_b"].astype(jnp.float32)
    x = src.astype(cd)

    def rep(shape):
        # whole-array block, same block for every grid step (weights/biases)
        return pl.BlockSpec(shape, lambda b, i, _n=len(shape): (0,) * _n)

    kernel = functools.partial(encoder_layer_kernel, nhead=nhead)

    # ---- cost estimate (advisory) --------------------------------------------
    dh = D // nhead
    flops_per_batch = (
        2 * S * D * (3 * D)            # qkv projections
        + 4 * nhead * S * S * dh       # scores + P@V
        + 2 * S * D * D                # output projection
        + 4 * S * D * F                # FFN (two matmuls)
    )
    itemsize = jnp.dtype(cd).itemsize
    weight_bytes = int(wq_t.size + wkv_t.size + wo_t.size
                       + w1_t.size + w2_t.size) * itemsize
    cost = pl.CostEstimate(
        flops=int(B * flops_per_batch),
        transcendentals=int(B * nhead * S * S),
        bytes_accessed=int(2 * B * S * D * itemsize + weight_bytes),
    )

    # ---- scoped VMEM limit: query the device, keep headroom ------------------
    try:
        vmem_limit = min(int(pltpu.get_tpu_info().vmem_capacity_bytes * 3 // 4),
                         100 * 1024 * 1024)
    except Exception:
        vmem_limit = None

    return pl.pallas_call(
        kernel,
        out_shape=jax.ShapeDtypeStruct((B, S, D), out_dtype),
        grid_spec=pltpu.PrefetchScalarGridSpec(
            num_scalar_prefetch=0,
            grid=(B, nqb),
            in_specs=[
                pl.BlockSpec((1, block_q, D), lambda b, i: (b, i, 0)),  # x (q rows)
                pl.BlockSpec((1, S, D), lambda b, i: (b, 0, 0)),        # x (full, K/V)
                rep((D, D)),          # wq_t
                rep((1, D)),          # bq
                rep((D, 2 * D)),      # wkv_t
                rep((1, 2 * D)),      # bkv
                rep((D, D)),          # wo_t
                rep((1, D)),          # bo
                rep((1, D)),          # ln1_w
                rep((1, D)),          # ln1_b
                rep((D, F)),          # w1_t
                rep((1, F)),          # b1
                rep((F, D)),          # w2_t
                rep((1, D)),          # b2
                rep((1, D)),          # ln2_w
                rep((1, D)),          # ln2_b
            ],
            out_specs=pl.BlockSpec((1, block_q, D), lambda b, i: (b, i, 0)),
            scratch_shapes=[pltpu.VMEM((block_q, D), cd)],
        ),
        compiler_params=pltpu.CompilerParams(
            dimension_semantics=("parallel", "parallel"),
            vmem_limit_bytes=vmem_limit),
        cost_estimate=cost,
    )(
        x, x,
        wq_t, bq, wkv_t, bkv,
        wo_t, bo,
        ln1w, ln1b,
        w1_t, b1, w2_t, b2,
        ln2w, ln2b,
    )


# ---------------------------------------------------------------------------
# pure-JAX reference (mirrors PyTorch semantics, dropout in eval mode)
# ---------------------------------------------------------------------------
def reference(src, params, *, nhead):
    B, S, D = src.shape
    dh = D // nhead

    def ln(x, w, b):
        mu = jnp.mean(x, axis=-1, keepdims=True)
        var = jnp.mean((x - mu) ** 2, axis=-1, keepdims=True)
        return (x - mu) * jax.lax.rsqrt(var + 1e-5) * w[0] + b[0]

    qkv = jnp.einsum("bsd,ed->bse", src, params["wqkv"]) + params["bqkv"][0]
    q, k, v = qkv[..., :D], qkv[..., D:2 * D], qkv[..., 2 * D:]
    q = q.reshape(B, S, nhead, dh).transpose(0, 2, 1, 3) / math.sqrt(dh)
    k = k.reshape(B, S, nhead, dh).transpose(0, 2, 1, 3)
    v = v.reshape(B, S, nhead, dh).transpose(0, 2, 1, 3)
    s = jnp.einsum("bhqd,bhkd->bhqk", q, k)
    p = jax.nn.softmax(s, axis=-1)
    o = jnp.einsum("bhqk,bhkd->bhqd", p, v).transpose(0, 2, 1, 3).reshape(B, S, D)
    o = jnp.einsum("bsd,ed->bse", o, params["wo"]) + params["bo"][0]

    y = ln(src + o, params["ln1_w"], params["ln1_b"])
    h = jax.nn.relu(jnp.einsum("bsd,fd->bsf", y, params["w1"]) + params["b1"][0])
    h = jnp.einsum("bsf,df->bsd", h, params["w2"]) + params["b2"][0]
    return ln(y + h, params["ln2_w"], params["ln2_b"])


if __name__ == "__main__":
    B, S = 2, 8
    d_model, nhead, dim_ff = 32, 4, 64

    key = jax.random.PRNGKey(0)
    keys = jax.random.split(key, 8)

    def init(k, shape, scale=0.1):
        return jax.random.normal(k, shape, dtype=jnp.float32) * scale

    params = {
        "wqkv":  init(keys[0], (3 * d_model, d_model)),
        "bqkv":  init(keys[1], (1, 3 * d_model)),
        "wo":    init(keys[2], (d_model, d_model)),
        "bo":    init(keys[3], (1, d_model)),
        "ln1_w": jnp.ones((1, d_model), jnp.float32),
        "ln1_b": jnp.zeros((1, d_model), jnp.float32),
        "w1":    init(keys[4], (dim_ff, d_model)),
        "b1":    init(keys[5], (1, dim_ff)),
        "w2":    init(keys[6], (d_model, dim_ff)),
        "b2":    init(keys[7], (1, d_model)),
        "ln2_w": jnp.ones((1, d_model), jnp.float32),
        "ln2_b": jnp.zeros((1, d_model), jnp.float32),
    }

    src = jax.random.normal(jax.random.PRNGKey(42), (B, S, d_model), jnp.float32)
    ref = reference(src, params, nhead=nhead)

    # f32 compute path (module-default numerics; approx reciprocal in softmax).
    out = transformer_encoder_layer(src, params, nhead=nhead)
    out = jax.block_until_ready(out)
    assert out.shape == (B, S, d_model)
    assert jnp.allclose(out, ref, atol=2e-3, rtol=2e-3), "f32 mismatch vs reference"

    # bf16 fast path (weights/activations bf16, f32 MXU accumulation).
    out_bf16 = transformer_encoder_layer(src, params, nhead=nhead,
                                         compute_dtype=jnp.bfloat16)
    out_bf16 = jax.block_until_ready(out_bf16)
    assert jnp.allclose(out_bf16, ref, atol=1e-1, rtol=1e-1), "bf16 mismatch vs reference"

    print("KERNEL_OK")
</pallas_src>

<mosaic_0001>
module attributes {stable_mosaic.version = 11 : i64} {
  func.func @encoder_layer_kernel(%arg0: i32, %arg1: i32, %arg2: memref<1x8x32xf32, #tpu.memory_space<vmem>>, %arg3: memref<1x8x32xf32, #tpu.memory_space<vmem>>, %arg4: memref<32x32xf32, #tpu.memory_space<vmem>>, %arg5: memref<1x32xf32, #tpu.memory_space<vmem>>, %arg6: memref<32x64xf32, #tpu.memory_space<vmem>>, %arg7: memref<1x64xf32, #tpu.memory_space<vmem>>, %arg8: memref<32x32xf32, #tpu.memory_space<vmem>>, %arg9: memref<1x32xf32, #tpu.memory_space<vmem>>, %arg10: memref<1x32xf32, #tpu.memory_space<vmem>>, %arg11: memref<1x32xf32, #tpu.memory_space<vmem>>, %arg12: memref<32x64xf32, #tpu.memory_space<vmem>>, %arg13: memref<1x64xf32, #tpu.memory_space<vmem>>, %arg14: memref<64x32xf32, #tpu.memory_space<vmem>>, %arg15: memref<1x32xf32, #tpu.memory_space<vmem>>, %arg16: memref<1x32xf32, #tpu.memory_space<vmem>>, %arg17: memref<1x32xf32, #tpu.memory_space<vmem>>, %arg18: memref<1x8x32xf32, #tpu.memory_space<vmem>>, %arg19: memref<8x32xf32, #tpu.memory_space<vmem>>) attributes {dimension_semantics = [#tpu.dimension_semantics<parallel>, #tpu.dimension_semantics<parallel>], iteration_bounds = array<i64: 2, 1>, scalar_prefetch = 0 : i64, scratch_operands = 1 : i64, tpu.core_type = #tpu.core_type<tc>, window_params = [{transform_indices = @transform_0, window_bounds = array<i64: 1, 8, 32>}, {transform_indices = @transform_1, window_bounds = array<i64: 1, 8, 32>}, {pipeline_mode = #tpu.pipeline_mode<synchronous>, transform_indices = @transform_2, window_bounds = array<i64: 32, 32>}, {pipeline_mode = #tpu.pipeline_mode<synchronous>, transform_indices = @transform_3, window_bounds = array<i64: 1, 32>}, {pipeline_mode = #tpu.pipeline_mode<synchronous>, transform_indices = @transform_4, window_bounds = array<i64: 32, 64>}, {pipeline_mode = #tpu.pipeline_mode<synchronous>, transform_indices = @transform_5, window_bounds = array<i64: 1, 64>}, {pipeline_mode = #tpu.pipeline_mode<synchronous>, transform_indices = @transform_6, window_bounds = array<i64: 32, 32>}, {pipeline_mode = #tpu.pipeline_mode<synchronous>, transform_indices = @transform_7, window_bounds = array<i64: 1, 32>}, {pipeline_mode = #tpu.pipeline_mode<synchronous>, transform_indices = @transform_8, window_bounds = array<i64: 1, 32>}, {pipeline_mode = #tpu.pipeline_mode<synchronous>, transform_indices = @transform_9, window_bounds = array<i64: 1, 32>}, {pipeline_mode = #tpu.pipeline_mode<synchronous>, transform_indices = @transform_10, window_bounds = array<i64: 32, 64>}, {pipeline_mode = #tpu.pipeline_mode<synchronous>, transform_indices = @transform_11, window_bounds = array<i64: 1, 64>}, {pipeline_mode = #tpu.pipeline_mode<synchronous>, transform_indices = @transform_12, window_bounds = array<i64: 64, 32>}, {pipeline_mode = #tpu.pipeline_mode<synchronous>, transform_indices = @transform_13, window_bounds = array<i64: 1, 32>}, {pipeline_mode = #tpu.pipeline_mode<synchronous>, transform_indices = @transform_14, window_bounds = array<i64: 1, 32>}, {pipeline_mode = #tpu.pipeline_mode<synchronous>, transform_indices = @transform_15, window_bounds = array<i64: 1, 32>}, {transform_indices = @transform_16, window_bounds = array<i64: 1, 8, 32>}]} {
    %c0 = arith.constant 0 : index
    %c0_0 = arith.constant 0 : index
    %c0_1 = arith.constant 0 : index
    %0 = vector.load %arg2[%c0, %c0_0, %c0_1] : memref<1x8x32xf32, #tpu.memory_space<vmem>>, vector<1x8x32xf32>
    %1 = vector.shape_cast %0 : vector<1x8x32xf32> to vector<8x32xf32>
    %c0_2 = arith.constant 0 : index
    %c0_3 = arith.constant 0 : index
    %c0_4 = arith.constant 0 : index
    %2 = vector.load %arg3[%c0_2, %c0_3, %c0_4] : memref<1x8x32xf32, #tpu.memory_space<vmem>>, vector<1x8x32xf32>
    %3 = vector.shape_cast %2 : vector<1x8x32xf32> to vector<8x32xf32>
    %c0_5 = arith.constant 0 : index
    %c0_6 = arith.constant 0 : index
    %4 = vector.load %arg4[%c0_5, %c0_6] : memref<32x32xf32, #tpu.memory_space<vmem>>, vector<32x32xf32>
    %cst = arith.constant dense<0.000000e+00> : vector<8x32xf32>
    %5 = tpu.matmul %1, %4, %cst {dimension_numbers = #tpu.dot_dimension_numbers<[1], [0], [0], [1], [0, 0, 1, 1], [], []>} : vector<8x32xf32>, vector<32x32xf32>, vector<8x32xf32> -> vector<8x32xf32>
    %c0_7 = arith.constant 0 : index
    %c0_8 = arith.constant 0 : index
    %6 = vector.load %arg5[%c0_7, %c0_8] : memref<1x32xf32, #tpu.memory_space<vmem>>, vector<1x32xf32>
    %7 = vector.broadcast %6 : vector<1x32xf32> to vector<8x32xf32>
    %8 = arith.addf %5, %7 : vector<8x32xf32>
    %c0_9 = arith.constant 0 : index
    %c0_10 = arith.constant 0 : index
    %9 = vector.load %arg6[%c0_9, %c0_10] : memref<32x64xf32, #tpu.memory_space<vmem>>, vector<32x64xf32>
    %cst_11 = arith.constant dense<0.000000e+00> : vector<8x64xf32>
    %10 = tpu.matmul %3, %9, %cst_11 {dimension_numbers = #tpu.dot_dimension_numbers<[1], [0], [0], [1], [0, 0, 1, 1], [], []>} : vector<8x32xf32>, vector<32x64xf32>, vector<8x64xf32> -> vector<8x64xf32>
    %c0_12 = arith.constant 0 : index
    %c0_13 = arith.constant 0 : index
    %11 = vector.load %arg7[%c0_12, %c0_13] : memref<1x64xf32, #tpu.memory_space<vmem>>, vector<1x64xf32>
    %12 = vector.broadcast %11 : vector<1x64xf32> to vector<8x64xf32>
    %13 = arith.addf %10, %12 : vector<8x64xf32>
    %cst_14 = arith.constant 0.353553385 : f32
    %14 = vector.broadcast %cst_14 : f32 to vector<8x32xf32>
    %15 = arith.mulf %8, %14 : vector<8x32xf32>
    %16 = vector.extract_strided_slice %13 {offsets = [0, 0], sizes = [8, 32], strides = [1, 1]} : vector<8x64xf32> to vector<8x32xf32>
    %17 = vector.extract_strided_slice %13 {offsets = [0, 32], sizes = [8, 32], strides = [1, 1]} : vector<8x64xf32> to vector<8x32xf32>
    %18 = vector.extract_strided_slice %15 {offsets = [0, 0], sizes = [8, 8], strides = [1, 1]} : vector<8x32xf32> to vector<8x8xf32>
    %19 = vector.extract_strided_slice %16 {offsets = [0, 0], sizes = [8, 8], strides = [1, 1]} : vector<8x32xf32> to vector<8x8xf32>
    %20 = vector.extract_strided_slice %17 {offsets = [0, 0], sizes = [8, 8], strides = [1, 1]} : vector<8x32xf32> to vector<8x8xf32>
    %cst_15 = arith.constant dense<0.000000e+00> : vector<8x8xf32>
    %21 = tpu.matmul %18, %19, %cst_15 {dimension_numbers = #tpu.dot_dimension_numbers<[1], [1], [0], [0], [0, 0, 1, 0], [], []>} : vector<8x8xf32>, vector<8x8xf32>, vector<8x8xf32> -> vector<8x8xf32>
    %cst_16 = arith.constant dense<0xFF800000> : vector<8xf32>
    %22 = vector.multi_reduction <maximumf>, %21, %cst_16 [1] : vector<8x8xf32> to vector<8xf32>
    %23 = vector.shape_cast %22 : vector<8xf32> to vector<8x1xf32>
    %24 = vector.broadcast %23 : vector<8x1xf32> to vector<8x8xf32>
    %25 = arith.subf %21, %24 : vector<8x8xf32>
    %26 = math.exp %25 : vector<8x8xf32>
    %cst_17 = arith.constant dense<0.000000e+00> : vector<8xf32>
    %27 = vector.multi_reduction <add>, %26, %cst_17 [1] : vector<8x8xf32> to vector<8xf32>
    %28 = vector.shape_cast %27 : vector<8xf32> to vector<8x1xf32>
    %cst_18 = arith.constant dense<0.000000e+00> : vector<8x8xf32>
    %29 = tpu.matmul %26, %20, %cst_18 {dimension_numbers = #tpu.dot_dimension_numbers<[1], [0], [0], [1], [0, 0, 1, 1], [], []>} : vector<8x8xf32>, vector<8x8xf32>, vector<8x8xf32> -> vector<8x8xf32>
    %30 = tpu.reciprocal %28 {approx = true} : vector<8x1xf32> -> vector<8x1xf32>
    %31 = vector.broadcast %30 : vector<8x1xf32> to vector<8x8xf32>
    %32 = arith.mulf %29, %31 : vector<8x8xf32>
    %c0_19 = arith.constant 0 : index
    %c0_20 = arith.constant 0 : index
    %33 = vector.load %arg19[%c0_19, %c0_20] : memref<8x32xf32, #tpu.memory_space<vmem>>, vector<8x8xf32>
    tpu.vector_store %arg19[%c0_19, %c0_20], %32 {strides = array<i32>} : memref<8x32xf32, #tpu.memory_space<vmem>>, vector<8x8xf32>,
    %34 = vector.extract_strided_slice %15 {offsets = [0, 8], sizes = [8, 8], strides = [1, 1]} : vector<8x32xf32> to vector<8x8xf32>
    %35 = vector.extract_strided_slice %16 {offsets = [0, 8], sizes = [8, 8], strides = [1, 1]} : vector<8x32xf32> to vector<8x8xf32>
    %36 = vector.extract_strided_slice %17 {offsets = [0, 8], sizes = [8, 8], strides = [1, 1]} : vector<8x32xf32> to vector<8x8xf32>
    %cst_21 = arith.constant dense<0.000000e+00> : vector<8x8xf32>
    %37 = tpu.matmul %34, %35, %cst_21 {dimension_numbers = #tpu.dot_dimension_numbers<[1], [1], [0], [0], [0, 0, 1, 0], [], []>} : vector<8x8xf32>, vector<8x8xf32>, vector<8x8xf32> -> vector<8x8xf32>
    %cst_22 = arith.constant dense<0xFF800000> : vector<8xf32>
    %38 = vector.multi_reduction <maximumf>, %37, %cst_22 [1] : vector<8x8xf32> to vector<8xf32>
    %39 = vector.shape_cast %38 : vector<8xf32> to vector<8x1xf32>
    %40 = vector.broadcast %39 : vector<8x1xf32> to vector<8x8xf32>
    %41 = arith.subf %37, %40 : vector<8x8xf32>
    %42 = math.exp %41 : vector<8x8xf32>
    %cst_23 = arith.constant dense<0.000000e+00> : vector<8xf32>
    %43 = vector.multi_reduction <add>, %42, %cst_23 [1] : vector<8x8xf32> to vector<8xf32>
    %44 = vector.shape_cast %43 : vector<8xf32> to vector<8x1xf32>
    %cst_24 = arith.constant dense<0.000000e+00> : vector<8x8xf32>
    %45 = tpu.matmul %42, %36, %cst_24 {dimension_numbers = #tpu.dot_dimension_numbers<[1], [0], [0], [1], [0, 0, 1, 1], [], []>} : vector<8x8xf32>, vector<8x8xf32>, vector<8x8xf32> -> vector<8x8xf32>
    %46 = tpu.reciprocal %44 {approx = true} : vector<8x1xf32> -> vector<8x1xf32>
    %47 = vector.broadcast %46 : vector<8x1xf32> to vector<8x8xf32>
    %48 = arith.mulf %45, %47 : vector<8x8xf32>
    %c0_25 = arith.constant 0 : index
    %c8 = arith.constant 8 : index
    %49 = vector.load %arg19[%c0_25, %c8] : memref<8x32xf32, #tpu.memory_space<vmem>>, vector<8x8xf32>
    tpu.vector_store %arg19[%c0_25, %c8], %48 {strides = array<i32>} : memref<8x32xf32, #tpu.memory_space<vmem>>, vector<8x8xf32>,
    %50 = vector.extract_strided_slice %15 {offsets = [0, 16], sizes = [8, 8], strides = [1, 1]} : vector<8x32xf32> to vector<8x8xf32>
    %51 = vector.extract_strided_slice %16 {offsets = [0, 16], sizes = [8, 8], strides = [1, 1]} : vector<8x32xf32> to vector<8x8xf32>
    %52 = vector.extract_strided_slice %17 {offsets = [0, 16], sizes = [8, 8], strides = [1, 1]} : vector<8x32xf32> to vector<8x8xf32>
    %cst_26 = arith.constant dense<0.000000e+00> : vector<8x8xf32>
    %53 = tpu.matmul %50, %51, %cst_26 {dimension_numbers = #tpu.dot_dimension_numbers<[1], [1], [0], [0], [0, 0, 1, 0], [], []>} : vector<8x8xf32>, vector<8x8xf32>, vector<8x8xf32> -> vector<8x8xf32>
    %cst_27 = arith.constant dense<0xFF800000> : vector<8xf32>
    %54 = vector.multi_reduction <maximumf>, %53, %cst_27 [1] : vector<8x8xf32> to vector<8xf32>
    %55 = vector.shape_cast %54 : vector<8xf32> to vector<8x1xf32>
    %56 = vector.broadcast %55 : vector<8x1xf32> to vector<8x8xf32>
    %57 = arith.subf %53, %56 : vector<8x8xf32>
    %58 = math.exp %57 : vector<8x8xf32>
    %cst_28 = arith.constant dense<0.000000e+00> : vector<8xf32>
    %59 = vector.multi_reduction <add>, %58, %cst_28 [1] : vector<8x8xf32> to vector<8xf32>
    %60 = vector.shape_cast %59 : vector<8xf32> to vector<8x1xf32>
    %cst_29 = arith.constant dense<0.000000e+00> : vector<8x8xf32>
    %61 = tpu.matmul %58, %52, %cst_29 {dimension_numbers = #tpu.dot_dimension_numbers<[1], [0], [0], [1], [0, 0, 1, 1], [], []>} : vector<8x8xf32>, vector<8x8xf32>, vector<8x8xf32> -> vector<8x8xf32>
    %62 = tpu.reciprocal %60 {approx = true} : vector<8x1xf32> -> vector<8x1xf32>
    %63 = vector.broadcast %62 : vector<8x1xf32> to vector<8x8xf32>
    %64 = arith.mulf %61, %63 : vector<8x8xf32>
    %c0_30 = arith.constant 0 : index
    %c16 = arith.constant 16 : index
    %65 = vector.load %arg19[%c0_30, %c16] : memref<8x32xf32, #tpu.memory_space<vmem>>, vector<8x8xf32>
    tpu.vector_store %arg19[%c0_30, %c16], %64 {strides = array<i32>} : memref<8x32xf32, #tpu.memory_space<vmem>>, vector<8x8xf32>,
    %66 = vector.extract_strided_slice %15 {offsets = [0, 24], sizes = [8, 8], strides = [1, 1]} : vector<8x32xf32> to vector<8x8xf32>
    %67 = vector.extract_strided_slice %16 {offsets = [0, 24], sizes = [8, 8], strides = [1, 1]} : vector<8x32xf32> to vector<8x8xf32>
    %68 = vector.extract_strided_slice %17 {offsets = [0, 24], sizes = [8, 8], strides = [1, 1]} : vector<8x32xf32> to vector<8x8xf32>
    %cst_31 = arith.constant dense<0.000000e+00> : vector<8x8xf32>
    %69 = tpu.matmul %66, %67, %cst_31 {dimension_numbers = #tpu.dot_dimension_numbers<[1], [1], [0], [0], [0, 0, 1, 0], [], []>} : vector<8x8xf32>, vector<8x8xf32>, vector<8x8xf32> -> vector<8x8xf32>
    %cst_32 = arith.constant dense<0xFF800000> : vector<8xf32>
    %70 = vector.multi_reduction <maximumf>, %69, %cst_32 [1] : vector<8x8xf32> to vector<8xf32>
    %71 = vector.shape_cast %70 : vector<8xf32> to vector<8x1xf32>
    %72 = vector.broadcast %71 : vector<8x1xf32> to vector<8x8xf32>
    %73 = arith.subf %69, %72 : vector<8x8xf32>
    %74 = math.exp %73 : vector<8x8xf32>
    %cst_33 = arith.constant dense<0.000000e+00> : vector<8xf32>
    %75 = vector.multi_reduction <add>, %74, %cst_33 [1] : vector<8x8xf32> to vector<8xf32>
    %76 = vector.shape_cast %75 : vector<8xf32> to vector<8x1xf32>
    %cst_34 = arith.constant dense<0.000000e+00> : vector<8x8xf32>
    %77 = tpu.matmul %74, %68, %cst_34 {dimension_numbers = #tpu.dot_dimension_numbers<[1], [0], [0], [1], [0, 0, 1, 1], [], []>} : vector<8x8xf32>, vector<8x8xf32>, vector<8x8xf32> -> vector<8x8xf32>
    %78 = tpu.reciprocal %76 {approx = true} : vector<8x1xf32> -> vector<8x1xf32>
    %79 = vector.broadcast %78 : vector<8x1xf32> to vector<8x8xf32>
    %80 = arith.mulf %77, %79 : vector<8x8xf32>
    %c0_35 = arith.constant 0 : index
    %c24 = arith.constant 24 : index
    %81 = vector.load %arg19[%c0_35, %c24] : memref<8x32xf32, #tpu.memory_space<vmem>>, vector<8x8xf32>
    tpu.vector_store %arg19[%c0_35, %c24], %80 {strides = array<i32>} : memref<8x32xf32, #tpu.memory_space<vmem>>, vector<8x8xf32>,
    %c0_36 = arith.constant 0 : index
    %c0_37 = arith.constant 0 : index
    %82 = vector.load %arg19[%c0_36, %c0_37] : memref<8x32xf32, #tpu.memory_space<vmem>>, vector<8x32xf32>
    %c0_38 = arith.constant 0 : index
    %c0_39 = arith.constant 0 : index
    %83 = vector.load %arg8[%c0_38, %c0_39] : memref<32x32xf32, #tpu.memory_space<vmem>>, vector<32x32xf32>
    %cst_40 = arith.constant dense<0.000000e+00> : vector<8x32xf32>
    %84 = tpu.matmul %82, %83, %cst_40 {dimension_numbers = #tpu.dot_dimension_numbers<[1], [0], [0], [1], [0, 0, 1, 1], [], []>} : vector<8x32xf32>, vector<32x32xf32>, vector<8x32xf32> -> vector<8x32xf32>
    %c0_41 = arith.constant 0 : index
    %c0_42 = arith.constant 0 : index
    %85 = vector.load %arg9[%c0_41, %c0_42] : memref<1x32xf32, #tpu.memory_space<vmem>>, vector<1x32xf32>
    %86 = vector.broadcast %85 : vector<1x32xf32> to vector<8x32xf32>
    %87 = arith.addf %84, %86 : vector<8x32xf32>
    %88 = arith.addf %1, %87 : vector<8x32xf32>
    %c0_43 = arith.constant 0 : index
    %c0_44 = arith.constant 0 : index
    %89 = vector.load %arg10[%c0_43, %c0_44] : memref<1x32xf32, #tpu.memory_space<vmem>>, vector<1x32xf32>
    %c0_45 = arith.constant 0 : index
    %c0_46 = arith.constant 0 : index
    %90 = vector.load %arg11[%c0_45, %c0_46] : memref<1x32xf32, #tpu.memory_space<vmem>>, vector<1x32xf32>
    %cst_47 = arith.constant dense<0.000000e+00> : vector<8xf32>
    %91 = vector.multi_reduction <add>, %88, %cst_47 [1] : vector<8x32xf32> to vector<8xf32>
    %92 = vector.shape_cast %91 : vector<8xf32> to vector<8x1xf32>
    %cst_48 = arith.constant 3.200000e+01 : f32
    %93 = vector.broadcast %cst_48 : f32 to vector<8x1xf32>
    %94 = arith.divf %92, %93 : vector<8x1xf32>
    %95 = vector.broadcast %94 : vector<8x1xf32> to vector<8x32xf32>
    %96 = arith.subf %88, %95 : vector<8x32xf32>
    %97 = arith.mulf %96, %96 : vector<8x32xf32>
    %cst_49 = arith.constant dense<0.000000e+00> : vector<8xf32>
    %98 = vector.multi_reduction <add>, %97, %cst_49 [1] : vector<8x32xf32> to vector<8xf32>
    %99 = vector.shape_cast %98 : vector<8xf32> to vector<8x1xf32>
    %cst_50 = arith.constant 3.200000e+01 : f32
    %100 = vector.broadcast %cst_50 : f32 to vector<8x1xf32>
    %101 = arith.divf %99, %100 : vector<8x1xf32>
    %cst_51 = arith.constant 9.99999974E-6 : f32
    %102 = vector.broadcast %cst_51 : f32 to vector<8x1xf32>
    %103 = arith.addf %101, %102 : vector<8x1xf32>
    %104 = math.rsqrt %103 : vector<8x1xf32>
    %105 = vector.broadcast %104 : vector<8x1xf32> to vector<8x32xf32>
    %106 = arith.mulf %96, %105 : vector<8x32xf32>
    %107 = vector.broadcast %89 : vector<1x32xf32> to vector<8x32xf32>
    %108 = arith.mulf %106, %107 : vector<8x32xf32>
    %109 = vector.broadcast %90 : vector<1x32xf32> to vector<8x32xf32>
    %110 = arith.addf %108, %109 : vector<8x32xf32>
    %c0_52 = arith.constant 0 : index
    %c0_53 = arith.constant 0 : index
    %111 = vector.load %arg12[%c0_52, %c0_53] : memref<32x64xf32, #tpu.memory_space<vmem>>, vector<32x64xf32>
    %cst_54 = arith.constant dense<0.000000e+00> : vector<8x64xf32>
    %112 = tpu.matmul %110, %111, %cst_54 {dimension_numbers = #tpu.dot_dimension_numbers<[1], [0], [0], [1], [0, 0, 1, 1], [], []>} : vector<8x32xf32>, vector<32x64xf32>, vector<8x64xf32> -> vector<8x64xf32>
    %c0_55 = arith.constant 0 : index
    %c0_56 = arith.constant 0 : index
    %113 = vector.load %arg13[%c0_55, %c0_56] : memref<1x64xf32, #tpu.memory_space<vmem>>, vector<1x64xf32>
    %114 = vector.broadcast %113 : vector<1x64xf32> to vector<8x64xf32>
    %115 = arith.addf %112, %114 : vector<8x64xf32>
    %cst_57 = arith.constant 0.000000e+00 : f32
    %116 = vector.broadcast %cst_57 : f32 to vector<8x64xf32>
    %117 = arith.maximumf %115, %116 : vector<8x64xf32>
    %c0_58 = arith.constant 0 : index
    %c0_59 = arith.constant 0 : index
    %118 = vector.load %arg14[%c0_58, %c0_59] : memref<64x32xf32, #tpu.memory_space<vmem>>, vector<64x32xf32>
    %cst_60 = arith.constant dense<0.000000e+00> : vector<8x32xf32>
    %119 = tpu.matmul %117, %118, %cst_60 {dimension_numbers = #tpu.dot_dimension_numbers<[1], [0], [0], [1], [0, 0, 1, 1], [], []>} : vector<8x64xf32>, vector<64x32xf32>, vector<8x32xf32> -> vector<8x32xf32>
    %c0_61 = arith.constant 0 : index
    %c0_62 = arith.constant 0 : index
    %120 = vector.load %arg15[%c0_61, %c0_62] : memref<1x32xf32, #tpu.memory_space<vmem>>, vector<1x32xf32>
    %121 = vector.broadcast %120 : vector<1x32xf32> to vector<8x32xf32>
    %122 = arith.addf %119, %121 : vector<8x32xf32>
    %123 = arith.addf %110, %122 : vector<8x32xf32>
    %c0_63 = arith.constant 0 : index
    %c0_64 = arith.constant 0 : index
    %124 = vector.load %arg16[%c0_63, %c0_64] : memref<1x32xf32, #tpu.memory_space<vmem>>, vector<1x32xf32>
    %c0_65 = arith.constant 0 : index
    %c0_66 = arith.constant 0 : index
    %125 = vector.load %arg17[%c0_65, %c0_66] : memref<1x32xf32, #tpu.memory_space<vmem>>, vector<1x32xf32>
    %cst_67 = arith.constant dense<0.000000e+00> : vector<8xf32>
    %126 = vector.multi_reduction <add>, %123, %cst_67 [1] : vector<8x32xf32> to vector<8xf32>
    %127 = vector.shape_cast %126 : vector<8xf32> to vector<8x1xf32>
    %cst_68 = arith.constant 3.200000e+01 : f32
    %128 = vector.broadcast %cst_68 : f32 to vector<8x1xf32>
    %129 = arith.divf %127, %128 : vector<8x1xf32>
    %130 = vector.broadcast %129 : vector<8x1xf32> to vector<8x32xf32>
    %131 = arith.subf %123, %130 : vector<8x32xf32>
    %132 = arith.mulf %131, %131 : vector<8x32xf32>
    %cst_69 = arith.constant dense<0.000000e+00> : vector<8xf32>
    %133 = vector.multi_reduction <add>, %132, %cst_69 [1] : vector<8x32xf32> to vector<8xf32>
    %134 = vector.shape_cast %133 : vector<8xf32> to vector<8x1xf32>
    %cst_70 = arith.constant 3.200000e+01 : f32
    %135 = vector.broadcast %cst_70 : f32 to vector<8x1xf32>
    %136 = arith.divf %134, %135 : vector<8x1xf32>
    %cst_71 = arith.constant 9.99999974E-6 : f32
    %137 = vector.broadcast %cst_71 : f32 to vector<8x1xf32>
    %138 = arith.addf %136, %137 : vector<8x1xf32>
    %139 = math.rsqrt %138 : vector<8x1xf32>
    %140 = vector.broadcast %139 : vector<8x1xf32> to vector<8x32xf32>
    %141 = arith.mulf %131, %140 : vector<8x32xf32>
    %142 = vector.broadcast %124 : vector<1x32xf32> to vector<8x32xf32>
    %143 = arith.mulf %141, %142 : vector<8x32xf32>
    %144 = vector.broadcast %125 : vector<1x32xf32> to vector<8x32xf32>
    %145 = arith.addf %143, %144 : vector<8x32xf32>
    %c0_72 = arith.constant 0 : index
    %c0_73 = arith.constant 0 : index
    %c0_74 = arith.constant 0 : index
    %146 = vector.load %arg18[%c0_72, %c0_73, %c0_74] : memref<1x8x32xf32, #tpu.memory_space<vmem>>, vector<1x8x32xf32>
    %147 = vector.shape_cast %146 : vector<1x8x32xf32> to vector<8x32xf32>
    %148 = vector.shape_cast %145 : vector<8x32xf32> to vector<1x8x32xf32>
    tpu.vector_store %arg18[%c0_72, %c0_73, %c0_74], %148 {strides = array<i32>} : memref<1x8x32xf32, #tpu.memory_space<vmem>>, vector<1x8x32xf32>,
    return
  }
  func.func @transform_0(%arg0: i32, %arg1: i32) -> (i32, i32, i32) {
    %c0_i32 = arith.constant 0 : i32
    %c0_i32_0 = arith.constant 0 : i32
    return %arg0, %arg1, %c0_i32 : i32, i32, i32
  }
  func.func @transform_1(%arg0: i32, %arg1: i32) -> (i32, i32, i32) {
    %c0_i32 = arith.constant 0 : i32
    %c0_i32_0 = arith.constant 0 : i32
    %c0_i32_1 = arith.constant 0 : i32
    return %arg0, %c0_i32, %c0_i32_0 : i32, i32, i32
  }
  func.func @transform_2(%arg0: i32, %arg1: i32) -> (i32, i32) {
    %c0_i32 = arith.constant 0 : i32
    %c0_i32_0 = arith.constant 0 : i32
    %c0_i32_1 = arith.constant 0 : i32
    return %c0_i32, %c0_i32_0 : i32, i32
  }
  func.func @transform_3(%arg0: i32, %arg1: i32) -> (i32, i32) {
    %c0_i32 = arith.constant 0 : i32
    %c0_i32_0 = arith.constant 0 : i32
    %c0_i32_1 = arith.constant 0 : i32
    return %c0_i32, %c0_i32_0 : i32, i32
  }
  func.func @transform_4(%arg0: i32, %arg1: i32) -> (i32, i32) {
    %c0_i32 = arith.constant 0 : i32
    %c0_i32_0 = arith.constant 0 : i32
    %c0_i32_1 = arith.constant 0 : i32
    return %c0_i32, %c0_i32_0 : i32, i32
  }
  func.func @transform_5(%arg0: i32, %arg1: i32) -> (i32, i32) {
    %c0_i32 = arith.constant 0 : i32
    %c0_i32_0 = arith.constant 0 : i32
    %c0_i32_1 = arith.constant 0 : i32
    return %c0_i32, %c0_i32_0 : i32, i32
  }
  func.func @transform_6(%arg0: i32, %arg1: i32) -> (i32, i32) {
    %c0_i32 = arith.constant 0 : i32
    %c0_i32_0 = arith.constant 0 : i32
    %c0_i32_1 = arith.constant 0 : i32
    return %c0_i32, %c0_i32_0 : i32, i32
  }
  func.func @transform_7(%arg0: i32, %arg1: i32) -> (i32, i32) {
    %c0_i32 = arith.constant 0 : i32
    %c0_i32_0 = arith.constant 0 : i32
    %c0_i32_1 = arith.constant 0 : i32
    return %c0_i32, %c0_i32_0 : i32, i32
  }
  func.func @transform_8(%arg0: i32, %arg1: i32) -> (i32, i32) {
    %c0_i32 = arith.constant 0 : i32
    %c0_i32_0 = arith.constant 0 : i32
    %c0_i32_1 = arith.constant 0 : i32
    return %c0_i32, %c0_i32_0 : i32, i32
  }
  func.func @transform_9(%arg0: i32, %arg1: i32) -> (i32, i32) {
    %c0_i32 = arith.constant 0 : i32
    %c0_i32_0 = arith.constant 0 : i32
    %c0_i32_1 = arith.constant 0 : i32
    return %c0_i32, %c0_i32_0 : i32, i32
  }
  func.func @transform_10(%arg0: i32, %arg1: i32) -> (i32, i32) {
    %c0_i32 = arith.constant 0 : i32
    %c0_i32_0 = arith.constant 0 : i32
    %c0_i32_1 = arith.constant 0 : i32
    return %c0_i32, %c0_i32_0 : i32, i32
  }
  func.func @transform_11(%arg0: i32, %arg1: i32) -> (i32, i32) {
    %c0_i32 = arith.constant 0 : i32
    %c0_i32_0 = arith.constant 0 : i32
    %c0_i32_1 = arith.constant 0 : i32
    return %c0_i32, %c0_i32_0 : i32, i32
  }
  func.func @transform_12(%arg0: i32, %arg1: i32) -> (i32, i32) {
    %c0_i32 = arith.constant 0 : i32
    %c0_i32_0 = arith.constant 0 : i32
    %c0_i32_1 = arith.constant 0 : i32
    return %c0_i32, %c0_i32_0 : i32, i32
  }
  func.func @transform_13(%arg0: i32, %arg1: i32) -> (i32, i32) {
    %c0_i32 = arith.constant 0 : i32
    %c0_i32_0 = arith.constant 0 : i32
    %c0_i32_1 = arith.constant 0 : i32
    return %c0_i32, %c0_i32_0 : i32, i32
  }
  func.func @transform_14(%arg0: i32, %arg1: i32) -> (i32, i32) {
    %c0_i32 = arith.constant 0 : i32
    %c0_i32_0 = arith.constant 0 : i32
    %c0_i32_1 = arith.constant 0 : i32
    return %c0_i32, %c0_i32_0 : i32, i32
  }
  func.func @transform_15(%arg0: i32, %arg1: i32) -> (i32, i32) {
    %c0_i32 = arith.constant 0 : i32
    %c0_i32_0 = arith.constant 0 : i32
    %c0_i32_1 = arith.constant 0 : i32
    return %c0_i32, %c0_i32_0 : i32, i32
  }
  func.func @transform_16(%arg0: i32, %arg1: i32) -> (i32, i32, i32) {
    %c0_i32 = arith.constant 0 : i32
    %c0_i32_0 = arith.constant 0 : i32
    return %arg0, %arg1, %c0_i32 : i32, i32, i32
  }
}

</mosaic_0001>

<bundles_post_ra>
// kernel: tpu_custom_call.1
= control target key start
LH: loop header
LB: loop body
LE: loop exit
PB: predicated region body
PF: predicated region fallthrough
CT: control target
= control target key end

     0   :  { %s2861_s0 = inlined_call_operand.hbm [shape: f32[2,8,32], index: 0, kind: input, shape index: {}]   ;;  %s2862_s1 = inlined_call_operand.hbm [shape: f32[2,8,32], index: 1, kind: input, shape index: {}]   ;;  %s2863_s2 = inlined_call_operand.vmem [shape: f32[32,32], index: 2, kind: input, shape index: {}]   ;;  %s2864_s3 = inlined_call_operand.vmem [shape: f32[1,32], index: 3, kind: input, shape index: {}]   ;;  %s2865_s4 = inlined_call_operand.vmem [shape: f32[32,64], index: 4, kind: input, shape index: {}]   ;;  %s2866_s5 = inlined_call_operand.vmem [shape: f32[1,64], index: 5, kind: input, shape index: {}]   ;;  %s2867_s6 = inlined_call_operand.vmem [shape: f32[32,32], index: 6, kind: input, shape index: {}]   ;;  %s2868_s7 = inlined_call_operand.vmem [shape: f32[1,32], index: 7, kind: input, shape index: {}]   ;;  %s2869_s8 = inlined_call_operand.vmem [shape: f32[1,32], index: 8, kind: input, shape index: {}]   ;;  %s2870_s9 = inlined_call_operand.vmem [shape: f32[1,32], index: 9, kind: input, shape index: {}]   ;;  %s2871_s10 = inlined_call_operand.hbm [shape: f32[32,64], index: 10, kind: input, shape index: {}]   ;;  %s2872_s11 = inlined_call_operand.vmem [shape: f32[1,64], index: 11, kind: input, shape index: {}]   ;;  %s2873_s12 = inlined_call_operand.vmem [shape: f32[64,32], index: 12, kind: input, shape index: {}]   ;;  %s2874_s13 = inlined_call_operand.vmem [shape: f32[1,32], index: 13, kind: input, shape index: {}]   ;;  %s2875_s14 = inlined_call_operand.vmem [shape: f32[1,32], index: 14, kind: input, shape index: {}]   ;;  %s2876_s15 = inlined_call_operand.vmem [shape: f32[1,32], index: 15, kind: input, shape index: {}]   ;;  %s2877_s16 = inlined_call_operand.hbm [shape: f32[2,8,32], index: 16, kind: output, shape index: {}]  }
   0x1   :  { %2885 = sst [smem:[#allocation20_spill]] %s2861_s0 }
   0x2   :  { %2886 = sst [smem:[#allocation21_spill]] %s2869_s8 }
   0x3   :  { %2887 = sst [smem:[#allocation22_spill]] %s2870_s9 }
   0x4   :  { %2888 = sst [smem:[#allocation23_spill]] %s2871_s10 }
   0x5   :  { %2889 = sst [smem:[#allocation24_spill]] %s2872_s11 }
   0x6   :  { %2890 = sst [smem:[#allocation25_spill]] %s2874_s13 }
   0x7   :  { %2891 = sst [smem:[#allocation26_spill]] %s2875_s14 }
   0x8   :  { %2892 = sst [smem:[#allocation27_spill]] %s2876_s15 }
   0x9   :  { %2893 = sst [smem:[#allocation28_spill]] %s2877_s16 }
   0xa   :  { %21 = vsyncpa [#allocation4], 0 }
   0xb   :  { %23 = vsyncpa [#allocation4 + $0x1], 0 }
   0xc   :  { %24 = vsyncpa [#allocation7], 0 }
   0xd   :  { %26 = vsyncpa [#allocation7 + $0x1], 0 }
   0xe   :  { %27 = vsyncpa [#allocation5], 0 }
   0xf   :  { %29 = vsyncpa [#allocation5 + $0x1], 0  ;;  %s2482_s21 = smov 0   ;;  %s2484_s22 = smov 0  }
  0x10   :  { %s2486_s23 = smov 0   ;;  %s2488_s24 = smov 0  }
  0x11   :  { %s2490_s25 = smov 0   ;;  %s2492_s26 = smov 0  }
  0x12 LB: > { %2894 = sst [smem:[#allocation14_spill]] %s2357_s21  ;;  %s2513_s27 = sadd.s32 4294967295, %s2377_s26   ;;  %s2377_s26 = sphi %s2492_s26, %s35_s26   ;;  %s2373_s25 = sphi %s2490_s25, %s2924_s25   ;;  %s2369_s24 = sphi %s2488_s24, %s2923_s24   ;;  %s2365_s23 = sphi %s2486_s23, %s2927_s23   ;;  %s2361_s22 = sphi %s2484_s22, %s2926_s22   ;;  %s2357_s21 = sphi %s2482_s21, %s2925_s21  }
  0x13   : > { %2895 = sst [smem:[#allocation15_spill]] %s2369_s24  ;;  %s1904_s28 = sadd.s32 4294967294, %s2377_s26  }
  0x14   : > { %2896 = sst [smem:[#allocation16_spill]] %s2373_s25  ;;  %p69_p0 = scmp.ne.s32.totalorder %s2361_s22, %s2357_s21 }
  0x15   : > { %p70_p1 = scmp.eq.s32.totalorder %s2513_s27, 0  ;;  %p421_p3 = scmp.eq.s32.totalorder %s1904_s28, 1 }
  0x16   : > { %p1905_p5 = scmp.ge.s32.totalorder %s2377_s26, 1  ;;  %p428_p7 = scmp.lt.s32.totalorder %s2377_s26, 3 }
  0x17   : > { %p2522_p4 = por %p70_p1, %p69_p0  ;;  %p2527_p6 = por %p421_p3, %p69_p0 }
  0x18   : > { %p2532_p8 = pnand %p1905_p5, %p428_p7  ;;  %s2379_s17 = smov [#allocation8]  }
  0x19   : > { %s2898_s30 = scalar_select %p2527_p6, 1, 0 }
  0x1a   : > { %s464_s18 = sshll.u32 %s2379_s17, 4  ;;  %p2105_p9 = pneg %p2532_p8  ;;  %s465_s18 = int_to_ptr.vmem [resolvable:$true] %s464_s18 }
  0x1b   : > { %2899 = sst [smem:[#allocation17_spill]] %s2898_s30  ;;  %s47_s20 = sadd.s32 1, %s2373_s25 }
  0x1c   : > { %p2541_p11 = pnand %p2105_p9, %p70_p1  ;;  %s2218_s28 = scalar_lea.vmem %s465_s18, 512 }
  0x1d   : > { %p2219_p13 = scmp.ne.s32.totalorder %s465_s18, %s2218_s28  ;;  %p2226_p5 = scmp.lt.s32.totalorder %s465_s18, %s465_s18 }
  0x1e   : > { %p2209_p12 = pneg %p2541_p11  ;;  %p2227_p7 = scmp.lt.s32.totalorder %s2218_s28, %s2218_s28 }
  0x20   : > { %p2221_p0 = pnand %p2219_p13, %p2209_p12  ;;  %p2228_p2 = por %p2227_p7, %p2226_p5 }
  0x22   : > { %p2222_p3 = pneg %p2221_p0 }
  0x24   : > { %p2229_p6 = pnand %p2228_p2, %p2222_p3 }
  0x26   : > { %2232 = shalt.err (!%p2229_p6)
}
  0x27   : > { %s2380_s17 = smov 128   ;;  %s2381_s30 = smov 8  }
  0x28   : > { %s2902_s10 = sld [smem:[#allocation23_spill]]  ;;  %p49_p2 = scmp.ge.s32.totalorder %s47_s20, 2 }
  0x29   : > { %s56_s28 = sadd.s32 1, %s2365_s23  ;;  %p63_p6 = scmp.ne.s32.totalorder %s2365_s23, %s2361_s22 }
  0x2a   : > { %p64_p9 = scmp.eq.s32.totalorder %s2377_s26, 0  ;;  %s2929_s20 = smov (%p49_p2, %s47_s20), 0 }
  0x2b   : > { %2903 = sst [smem:[#allocation18_spill]] %s2929_s20  ;;  %p2905_p13 = scmp.eq.s32.totalorder %s2513_s27, 1 }
  0x2c   : > { %p2559_p12 = por %p64_p9, %p63_p6  ;;  %s51_s16 = ssub.s32 %s2373_s25, %s2929_s20 }
  0x2d   : > { %p2565_p0 = por %p2905_p13, %p63_p6  ;;  %p54_p3 = scmp.eq.s32.totalorder %s51_s16, 0 }
  0x2e   : > { %2108 = dma.hbm_to_vmem [thread:$0]  (!%p2541_p11), %s2902_s10, 512, %s465_s18, [#allocation7], %s2380_s17, %s2380_s17, %s2381_s30  }
  0x2f   : > { %s2906_s19 = scalar_select %p2565_p0, 1, 0 }
  0x30   : > { %p2121_p11 = scmp.lt.s32.totalorder %s2377_s26, 2  ;;  %s493_s21 = sand.u32 1, %s2365_s23  }
  0x31   : > { %2907 = sst [smem:[#allocation19_spill]] %s2906_s19  ;;  %s1908_s30 = sshll.u32 %s493_s21, 3 }
  0x32   : > { %s2574_s18 = scalar_select %p54_p3, %s2365_s23, %s56_s28  }
  0x33   : > { %s1909_s17 = sshll.u32 %s2373_s25, 7  ;;  %s2908_s24 = sld [smem:[#allocation20_spill]] }
  0x34   : > { %s497_s11 = scalar_lea.vmem [#allocation3], %s1908_s30  ;;  %p2582_p5 = pnand %p2121_p11, %p2559_p12 }
  0x35   : > { %s505_s9 = sshll.u32 %s497_s11, 4  ;;  %s2589_s28 = scalar_lea.hbm %s2862_s1, %s1909_s17  ;;  %s506_s9 = int_to_ptr.vmem [resolvable:$true] %s505_s9 }
  0x36   : > { %s512_s16 = sand.u32 1, %s2377_s26   ;;  %s494_s25 = scalar_lea.sflag [#allocation4], %s493_s21 }
  0x37   : > { %p2235_p7 = pneg %p2582_p5  ;;  %s2246_s10 = scalar_lea.vmem %s506_s9, 128 }
  0x38   : > { %p2247_p2 = scmp.ne.s32.totalorder %s506_s9, %s2246_s10  ;;  %s2382_s11 = smov [#allocation3]  }
  0x39   : > { %s503_s13 = scalar_lea.hbm %s2908_s24, %s1909_s17  ;;  %s2251_s14 = sshll.u32 %s2382_s11, 4  ;;  %s2252_s14 = int_to_ptr.vmem [resolvable:$false] %s2251_s14 }
  0x3a   : > { %p2249_p6 = pnand %p2247_p2, %p2235_p7  ;;  %s2253_s15 = scalar_lea.vmem %s2252_s14, 256 }
  0x3b   : > { %p2254_p12 = scmp.lt.s32.totalorder %s506_s9, %s2252_s14  ;;  %p2255_p13 = scmp.lt.s32.totalorder %s2253_s15, %s2246_s10 }
  0x3c   : > { %p2250_p9 = pneg %p2249_p6 }
  0x3d   : > { %p2256_p11 = por %p2255_p13, %p2254_p12 }
  0x3f   : > { %p2257_p3 = pnand %p2256_p11, %p2250_p9 }
  0x41   : > { %2260 = shalt.err (!%p2257_p3)
}
  0x42   : > { %2112 = dma.hbm_to_vmem [thread:$0]  (!%p2582_p5), %s503_s13, 128, %s506_s9, %s494_s25  }
  0x43   : > { %s516_s24 = scalar_lea.vmem [#allocation6], %s1908_s30  ;;  %s513_s19 = scalar_lea.sflag [#allocation7], %s512_s16 }
  0x44   : > { %s523_s20 = sshll.u32 %s516_s24, 4  ;;  %s2383_s17 = smov [#allocation6]   ;;  %s524_s20 = int_to_ptr.vmem [resolvable:$true] %s523_s20 }
  0x45   : > { %s2274_s21 = scalar_lea.vmem %s524_s20, 128  ;;  %s2279_s11 = sshll.u32 %s2383_s17, 4  ;;  %s2280_s11 = int_to_ptr.vmem [resolvable:$false] %s2279_s11 }
  0x46   : > { %p2275_p2 = scmp.ne.s32.totalorder %s524_s20, %s2274_s21  ;;  %s2281_s10 = scalar_lea.vmem %s2280_s11, 256 }
  0x47   : > { %p2282_p9 = scmp.lt.s32.totalorder %s524_s20, %s2280_s11  ;;  %p2283_p12 = scmp.lt.s32.totalorder %s2281_s10, %s2274_s21 }
  0x48   : > { %p2277_p6 = pnand %p2275_p2, %p2235_p7 }
  0x49   : > { %p2284_p13 = por %p2283_p12, %p2282_p9 }
  0x4a   : > { %p2278_p10 = pneg %p2277_p6 }
  0x4c   : > { %p2285_p11 = pnand %p2284_p13, %p2278_p10 }
  0x4e   : > { %2288 = shalt.err (!%p2285_p11)
}
  0x4f   : > { %2115 = dma.hbm_to_vmem [thread:$0]  (!%p2582_p5), %s2589_s28, 128, %s524_s20, %s513_s19  }
  0x50   : > { %532 = sbr.rel (%p2532_p8) target bundleno = 2320 (0x910), region = 84  ;;  %s2608_s9 = sand.u32 (!%p2532_p8), 1, %s2361_s22  }
  0x51   : > { %s2611_s13 = sshll.u32 (!%p2532_p8), %s2608_s9, 3  ;;  %s535_s25 = scalar_lea.sflag (!%p2532_p8), [#allocation4], %s2608_s9 }
  0x52   : > { %s538_s30 = scalar_lea.vmem (!%p2532_p8), [#allocation3], %s2611_s13 }
  0x55   : > { %2340 = dma.done.wait (%p2522_p4), %s535_s25, 128  }
  0x56   : > { %2342 = vsyncadd (%p2522_p4), %s535_s25, 4294967168  ;;  %s543_s8 = sand.u32 1, %s2513_s27   ;;  %s547_s28 = scalar_lea.vmem [#allocation6], %s2611_s13 }
  0x57   : > { %s544_s0 = scalar_lea.sflag [#allocation7], %s543_s8 }
  0x58   : > { %2344 = dma.done.wait (%p2522_p4), %s544_s0, 128  }
  0x59   : > { %2346 = vsyncadd (%p2522_p4), %s544_s0, 4294967168 }
  0x5a   : > { %2348 = dma.done.wait (%p70_p1), [#allocation7], 512  }
  0x5b   : > { %2350 = vsyncadd (%p70_p1), [#allocation7], 4294966784  ;;  %v2384_v0 = vmov 0.0   ;;  %vm2385_vm0 = vmmov 0   ;;  %v610_v1 = vld [vmem:[%s2863_s2 + $0x18] sm:$0xff]  ;;  %v609_v2 = vld [vmem:[%s2863_s2 + $0x10] sm:$0xff] }
  0x5c   : > { %1992 = vmatprep.subr.mxu1 %v2384_v0  ;;  %2000 = vmatprep.mubr.msk.f32.mxu1 %vm2385_vm0, %v2384_v0  ;;  %v608_v3 = vld [vmem:[%s2863_s2 + $0x8] sm:$0xff]  ;;  %v607_v4 = vld [vmem:[%s2863_s2] sm:$0xff]  ;;  %vm618_vm1 = vcmask 261120   ;;  %v695_v6 = vld [vmem:[%s2865_s4 + $0x18] sm:$0xff]  ;;  %vm777_vm2 = vcmask 64512   ;;  %s2387_s27 = smov 120  }
  0x5d   : > { %2014 = vmatprep.subr.mxu0 %v2384_v0  ;;  %2016 = vmatprep.mubr.msk.f32.mxu0 %vm2385_vm0, %v2384_v0  ;;  %v2649_v5 = vld [vmem:[%s538_s30] sm:$0xff]  ;;  %v692_v9 = vld [vmem:[%s2865_s4] sm:$0xff]  ;;  %s2388_s24 = smov 104   ;;  %s2389_s20 = smov 96   ;;  %vm1111_vm3 = vcmask 130112   ;;  %vm1282_vm4 = vcmask 195712  }
  0x5e   : > { %1993 = vmatpush3.msra.mxu1 %v610_v1  ;;  %v694_v7 = vld [vmem:[%s2865_s4 + $0x10] sm:$0xff]  ;;  %v693_v8 = vld [vmem:[%s2865_s4 + $0x8] sm:$0xff]  ;;  %v606_v10 = vld [vmem:[%s547_s28] sm:$0xff]  ;;  %s2386_s28 = smov 112   ;;  %s2390_s19 = smov 80   ;;  %vm1453_vm5 = vcmask 261312  }
  0x5f   : > { %1994 = vmatprep.subr.mxu1 %v2384_v0  ;;  %v1917_v13 = vld [vmem:[%s2864_s3] ss:$0 sm:$0xff]  ;;  %s2391_s21 = smov 72   ;;  %s2392_s17 = smov 88   ;;  %vm1671_vm6 = vcmask 523264  }
  0x60   : > { %1995 = vmatpush3.msra.mxu1 %v609_v2  ;;  %v1919_v14 = vld [vmem:[%s2866_s5] ss:$0 sm:$0xff]  ;;  %s2393_s14 = smov 8   ;;  %s2394_s15 = smov 16  }
  0x61   : > { %1996 = vmatprep.subr.mxu1 %v2384_v0  ;;  %s2912_s30 = sld [smem:[#allocation24_spill]]  ;;  %s1777_s0 = scalar_lea.sflag [#allocation5], %s2608_s9 }
  0x62   : > { %1997 = vmatpush3.msra.mxu1 %v608_v3  ;;  %s2913_s29 = sld [smem:[#allocation25_spill]] }
  0x63   : > { %1998 = vmatprep.subr.mxu1 %v2384_v0  ;;  %s2914_s16 = sld [smem:[#allocation15_spill]] }
  0x64   : > { %1999 = vmatpush3.msra.mxu1 %v607_v4 }
  0x65   : > { %2001 = vmatmul.mubr.msk.f32.vlgmr.msra.gmra.mxu1 %vm618_vm1, %v2649_v5  ;;  %2003 = vmatprep.subr.mxu1 %v2384_v0 }
  0x66   : > { %2004 = vmatpush3.msra.mxu1 %v695_v6  ;;  %2011 = vmatprep.mubr.msk.f32.mxu1 %vm2385_vm0, %v2384_v0 }
  0x67   : > { %2005 = vmatprep.subr.mxu1 %v2384_v0 }
  0x68   : > { %2006 = vmatpush3.msra.mxu1 %v694_v7 }
  0x69   : > { %2007 = vmatprep.subr.mxu1 %v2384_v0 }
  0x6a   : > { %2008 = vmatpush3.msra.mxu1 %v693_v8  ;;  %v1459_v8 = vld [vmem:[%s2867_s6 + $0x18] sm:$0xff] }
  0x6b   : > { %2009 = vmatprep.subr.mxu1 %v2384_v0 }
  0x6c   : > { %2010 = vmatpush3.msra.mxu1 %v692_v9  ;;  %v1458_v9 = vld [vmem:[%s2867_s6 + $0x10] sm:$0xff] }
  0x6d   : > { %2012 = vmatmul.mubr.msk.f32.vlgmr.msra.gmra.mxu1 %vm618_vm1, %v606_v10  ;;  %2019 = vmatprep.subr.mxu1 %v2384_v0 }
  0x6e   : > { %2021 = vmatprep.mubr.msk.f32.mxu1 %vm2385_vm0, %v2384_v0 }
 0x125   : > { %v688_v11 = vpop.f32.mrf.mxu1 }
 0x126   : > { %v689_v16 = vadd.f32 %v1917_v13, %v688_v11 }
 0x127   : > { %v2002_v12 = vpop.f32.mrf.mxu1 }
 0x128   : > { %v776_v19 = vmul.f32 0.35355338, %v689_v16  ;;  %v1457_v12 = vld [vmem:[%s2867_s6 + $0x8] sm:$0xff] }
 0x12d   : > { %v772_v15 = vpop.f32.mrf.mxu1 }
 0x12e   : > { %v2684_v17 = vadd.f32 %v1919_v14, %v772_v15  ;;  %v1456_v15 = vld [vmem:[%s2867_s6] sm:$0xff] }
 0x12f   : > { %v2013_v18 = vpop.f32.mrf.mxu1 }
 0x130   : > { %1115 = vrot.lane.b32.xlu1 %v2684_v17, %s2386_s28  ;;  %944 = vrot.lane.b32.xlu0 %v2684_v17, %s2387_s27 }
 0x131   : > { %2015 = vmatpush3.xpose.msk.msra.mxu0 %vm777_vm2, %v2684_v17 }
 0x132   : > { %2024 = vmatprep.subr.mxu0 %v2384_v0 }
 0x134   : > { %2017 = vmatmul.mubr.msk.f32.vlgmr.msra.gmra.mxu0 %vm777_vm2, %v776_v19  ;;  %1113 = vrot.lane.b32.xlu1 %v776_v19, %s2386_s28  ;;  %s2395_s28 = smov 24  }
 0x135   : > { %942 = vrot.lane.b32.xlu0 %v776_v19, %s2387_s27  ;;  %2026 = vmatprep.mubr.msk.f32.mxu0 %vm2385_vm0, %v2384_v0  ;;  %s2911_s27 = sld [smem:[#allocation22_spill]] }
 0x138   : > { %1284 = vrot.lane.b32.xlu1 %v776_v19, %s2388_s24 }
 0x139   : > { %1286 = vrot.lane.b32.xlu0 %v2684_v17, %s2388_s24 }
 0x13c   : > { %863 = vrot.lane.b32.xlu1 %v2684_v17, %s2389_s20 }
 0x1a2   : > { %v1116_v20 = vpop.permute.xlu1 %1115  ;;  %v945_v21 = vpop.permute.xlu0 %944 }
 0x1a3   : > { %2025 = vmatpush3.xpose.msk.msra.mxu0 %vm777_vm2, %v945_v21 }
 0x1a4   : > { %2034 = vmatprep.subr.mxu0 %v2384_v0 }
 0x1a6   : > { %v1114_v22 = vpop.permute.xlu1 %1113 }
 0x1a7   : > { %v943_v23 = vpop.permute.xlu0 %942 }
 0x1a8   : > { %2027 = vmatmul.mubr.msk.f32.vlgmr.msra.gmra.mxu0 %vm777_vm2, %v943_v23 }
 0x1a9   : > { %2035 = vmatpush3.xpose.msk.msra.mxu0 %vm777_vm2, %v1116_v20  ;;  %2036 = vmatprep.mubr.msk.f32.mxu0 %vm2385_vm0, %v2384_v0 }
 0x1aa   : > { %v1285_v24 = vpop.permute.xlu1 %1284  ;;  %2044 = vmatprep.subr.mxu0 %v2384_v0 }
 0x1ab   : > { %v1287_v25 = vpop.permute.xlu0 %1286 }
 0x1ac   : > { %2037 = vmatmul.mubr.msk.f32.vlgmr.msra.gmra.mxu0 %vm777_vm2, %v1114_v22 }
 0x1ad   : > { %2045 = vmatpush3.xpose.msk.msra.mxu0 %vm777_vm2, %v1287_v25  ;;  %2046 = vmatprep.mubr.msk.f32.mxu0 %vm2385_vm0, %v2384_v0 }
 0x1ae   : > { %v864_v26 = vpop.permute.xlu1 %863  ;;  %2054 = vmatprep.subr.mxu0 %v2384_v0 }
 0x1af   : > { %2020 = vmatpush3.msra.mxu1 %v864_v26 }
 0x1b0   : > { %2047 = vmatmul.mubr.msk.f32.vlgmr.msra.gmra.mxu0 %vm777_vm2, %v1285_v24  ;;  %2029 = vmatprep.subr.mxu1 %v2384_v0 }
 0x1b1   : > { %2062 = vmatprep.mubr.msk.f32.mxu0 %vm2385_vm0, %v2384_v0  ;;  %2055 = vmatpush3.msra.mxu0 %v1459_v8 }
 0x1b2   : > { %2056 = vmatprep.subr.mxu0 %v2384_v0 }
 0x1b3   : > { %2057 = vmatpush3.msra.mxu0 %v1458_v9 }
 0x1b4   : > { %2058 = vmatprep.subr.mxu0 %v2384_v0 }
 0x1b5   : > { %2059 = vmatpush3.msra.mxu0 %v1457_v12 }
 0x1b6   : > { %2060 = vmatprep.subr.mxu0 %v2384_v0 }
 0x1b7   : > { %2061 = vmatpush3.msra.mxu0 %v1456_v15 }
 0x1b8   : > { %2076 = vmatprep.subr.mxu0 %v2384_v0 }
 0x1f4   : > { %v850_v27 = vpop.f32.mrf.mxu0 }
 0x1f5   : > { %v854_v28 = vsel %vm777_vm2, %v850_v27, -inf }
 0x1f6   : > { %855 = vmax.xlane.f32.xlu0 %v854_v28  ;;  %v2018_v29 = vpop.f32.mrf.mxu0  ;;  %v1933_v28 = vld [vmem:[%s2868_s7] ss:$0 sm:$0xff] }
 0x268   : > { %v1016_v30 = vpop.f32.mrf.mxu0 }
 0x269   : > { %v1020_v31 = vsel %vm777_vm2, %v1016_v30, -inf }
 0x26a   : > { %1021 = vmax.xlane.f32.xlu1 %v1020_v31  ;;  %v2028_v32 = vpop.f32.mrf.mxu0 }
 0x26c   : > { %v1187_v33 = vpop.f32.mrf.mxu0 }
 0x26d   : > { %v1191_v34 = vsel %vm777_vm2, %v1187_v33, -inf }
 0x26e   : > { %1192 = vmax.xlane.f32.xlu0 %v1191_v34  ;;  %v2038_v35 = vpop.f32.mrf.mxu0 }
 0x270   : > { %v1358_v36 = vpop.f32.mrf.mxu0 }
 0x271   : > { %v1362_v37 = vsel %vm777_vm2, %v1358_v36, -inf }
 0x272   : > { %1363 = vmax.xlane.f32.xlu0 %v1362_v37  ;;  %v2048_v38 = vpop.f32.mrf.mxu0 }
 0x27b   : > { %1200 = vrot.lane.b32.xlu1 %v2684_v17, %s2390_s19  ;;  %s2917_s19 = sld [smem:[#allocation27_spill]] }
 0x27f   : > { %v856_v39 = vpop.xlane.xlu0 %855  ;;  %1371 = vrot.lane.b32.xlu1 %v2684_v17, %s2391_s21  ;;  %s1944_s21 = sshll.u32 %s2914_s16, 7 }
 0x280   : > { %v857_v40 = vsub.f32 %v850_v27, %v856_v39  ;;  %v1574_v39 = vld [vmem:[#allocation8 + $0x18] sm:$0xff] }
 0x282   : > { %v858_v41 = vmul.f32 1.442695, %v857_v40  ;;  %v1573_v40 = vld [vmem:[#allocation8 + $0x10] sm:$0xff] }
 0x284   : > { %2187 = vpow2.f32 %v858_v41  ;;  %v1572_v41 = vld [vmem:[#allocation8 + $0x8] sm:$0xff] }
 0x288   : > { %1029 = vrot.lane.b32.xlu0 %v2684_v17, %s2392_s17  ;;  %s604_s17 = scalar_lea.vmem [#allocation9], %s2611_s13 }
 0x289   : > { %s1791_s11 = sshll.u32 %s604_s17, 4  ;;  %s1792_s11 = int_to_ptr.vmem [resolvable:$true] %s1791_s11 }
 0x291   : > { %v2188_v42 = vpop.eup %2187 }
 0x292   : > { %2022 = vmatmul.mubr.msk.f32.vlgmr.msra.gmra.mxu1 %vm777_vm2, %v2188_v42  ;;  %v860_v61 = vsel %vm777_vm2, %v2188_v42, 0.0  ;;  %v1663_v42 = vld [vmem:[%s2873_s12 + $0x38] sm:$0xff] }
 0x293   : > { %2031 = vmatprep.mubr.msk.f32.mxu1 %vm2385_vm0, %v2384_v0 }
 0x2f3   : > { %v1022_v43 = vpop.xlane.xlu1 %1021 }
 0x2f4   : > { %v1023_v44 = vsub.f32 %v1016_v30, %v1022_v43  ;;  %v1662_v43 = vld [vmem:[%s2873_s12 + $0x30] sm:$0xff] }
 0x2f6   : > { %v1024_v45 = vmul.f32 1.442695, %v1023_v44  ;;  %v1661_v44 = vld [vmem:[%s2873_s12 + $0x28] sm:$0xff] }
 0x2f7   : > { %v1193_v46 = vpop.xlane.xlu0 %1192  ;;  %v1201_v53 = vpop.permute.xlu1 %1200 }
 0x2f8   : > { %2189 = vpow2.f32 %v1024_v45  ;;  %v1194_v47 = vsub.f32 %v1187_v33, %v1193_v46  ;;  %v1660_v45 = vld [vmem:[%s2873_s12 + $0x20] sm:$0xff]  ;;  %v1659_v46 = vld [vmem:[%s2873_s12 + $0x18] sm:$0xff] }
 0x2fa   : > { %v1195_v48 = vmul.f32 1.442695, %v1194_v47 }
 0x2fb   : > { %v1364_v49 = vpop.xlane.xlu0 %1363  ;;  %v1372_v57 = vpop.permute.xlu1 %1371 }
 0x2fc   : > { %2191 = vpow2.f32 %v1195_v48  ;;  %v1365_v50 = vsub.f32 %v1358_v36, %v1364_v49 }
 0x2fe   : > { %v1366_v51 = vmul.f32 1.442695, %v1365_v50 }
 0x2ff   : > { %v1030_v52 = vpop.permute.xlu0 %1029 }
 0x300   : > { %2193 = vpow2.f32 %v1366_v51  ;;  %2030 = vmatpush3.msra.mxu1 %v1030_v52 }
 0x301   : > { %2039 = vmatprep.subr.mxu1 %v2384_v0 }
 0x305   : > { %v2190_v54 = vpop.eup %2189 }
 0x306   : > { %2032 = vmatmul.mubr.msk.f32.vlgmr.msra.gmra.mxu1 %vm777_vm2, %v2190_v54  ;;  %v1026_v55 = vsel %vm777_vm2, %v2190_v54, 0.0 }
 0x307   : > { %2040 = vmatpush3.msra.mxu1 %v1201_v53  ;;  %1027 = vadd.xlane.f32.xlu0 %v1026_v55  ;;  %v1936_v53 = vld [vmem:[%s2911_s27] ss:$0 sm:$0xff]  ;;  %s2916_s27 = sld [smem:[#allocation26_spill]] }
 0x308   : > { %2041 = vmatprep.mubr.msk.f32.mxu1 %vm2385_vm0, %v2384_v0  ;;  %2049 = vmatprep.subr.mxu1 %v2384_v0 }
 0x309   : > { %v2192_v56 = vpop.eup %2191 }
 0x30a   : > { %2042 = vmatmul.mubr.msk.f32.vlgmr.msra.gmra.mxu1 %vm777_vm2, %v2192_v56  ;;  %v1197_v58 = vsel %vm777_vm2, %v2192_v56, 0.0  ;;  %v1658_v56 = vld [vmem:[%s2873_s12 + $0x10] sm:$0xff] }
 0x30b   : > { %2050 = vmatpush3.msra.mxu1 %v1372_v57  ;;  %1198 = vadd.xlane.f32.xlu1 %v1197_v58  ;;  %v1657_v57 = vld [vmem:[%s2873_s12 + $0x8] sm:$0xff]  ;;  %v1656_v58 = vld [vmem:[%s2873_s12] sm:$0xff] }
 0x30c   : > { %2051 = vmatprep.mubr.msk.f32.mxu1 %vm2385_vm0, %v2384_v0  ;;  %2065 = vmatprep.subr.mxu1 %v2384_v0 }
 0x30d   : > { %v2194_v59 = vpop.eup %2193 }
 0x30e   : > { %2052 = vmatmul.mubr.msk.f32.vlgmr.msra.gmra.mxu1 %vm777_vm2, %v2194_v59  ;;  %v1368_v60 = vsel %vm777_vm2, %v2194_v59, 0.0  ;;  %v1937_v59 = vld [vmem:[%s2912_s30] ss:$0 sm:$0xff]  ;;  %s2918_s30 = sld [smem:[#allocation28_spill]] }
 0x30f   : > { %1369 = vadd.xlane.f32.xlu0 %v1368_v60  ;;  %2073 = vmatprep.mubr.msk.f32.mxu1 %vm2385_vm0, %v2384_v0 }
 0x310   : > { %2066 = vmatpush3.msra.mxu1 %v1574_v39 }
 0x311   : > { %2067 = vmatprep.subr.mxu1 %v2384_v0 }
 0x312   : > { %2068 = vmatpush3.msra.mxu1 %v1573_v40 }
 0x313   : > { %861 = vadd.xlane.f32.xlu0 %v860_v61  ;;  %2069 = vmatprep.subr.mxu1 %v2384_v0 }
 0x314   : > { %2070 = vmatpush3.msra.mxu1 %v1572_v41  ;;  %s1789_s8 = scalar_lea.hbm %s2918_s30, %s1944_s21 }
 0x315   : > { %2071 = vmatprep.subr.mxu1 %v2384_v0 }
 0x352   : > { %v935_v62 = vpop.f32.mrf.mxu1 }
 0x354   : > { %v2023_v63 = vpop.f32.mrf.mxu1 }
 0x390   : > { %v1028_v1 = vpop.xlane.xlu0 %1027 }
 0x394   : > { %v1199_v7 = vpop.xlane.xlu1 %1198 }
 0x398   : > { %v1370_v2 = vpop.xlane.xlu0 %1369 }
 0x39c   : > { %v862_v3 = vpop.xlane.xlu0 %861 }
 0x39d   : > { %2195 = vrcp.f32 %v862_v3 }
 0x39e   : > { %2197 = vrcp.f32 %v1028_v1  ;;  %v1939_v1 = vld [vmem:[%s2913_s29] ss:$0 sm:$0xff]  ;;  %s2289_s29 = scalar_lea.vmem %s1792_s11, 128 }
 0x39f   : > { %2199 = vrcp.f32 %v1199_v7  ;;  %p2290_p1 = scmp.ne.s32.totalorder %s1792_s11, %s2289_s29 }
 0x3a0   : > { %2201 = vrcp.f32 %v1370_v2 }
 0x3a1   : > { %p2291_p4 = pnand %p2290_p1, %p2565_p0 }
 0x3a3   : > { %p2292_p8 = pneg %p2291_p4 }
 0x3aa   : > { %v2196_v4 = vpop.eup %2195 }
 0x3ab   : > { %v940_v6 = vmul.f32 %v2196_v4, %v935_v62  ;;  %v2198_v10 = vpop.eup %2197 }
 0x3ac   : > { %v2200_v16 = vpop.eup %2199 }
 0x3ad   : > { %941 = vst.msk [vmem:[#allocation2] sm:$0xff] %vm777_vm2, %v940_v6  ;;  %v2202_v20 = vpop.eup %2201 }
 0x3c6   : > { %v1101_v11 = vpop.f32.mrf.mxu1 }
 0x3c7   : > { %v1106_v13 = vmul.f32 %v2198_v10, %v1101_v11 }
 0x3c8   : > { %v2033_v14 = vpop.f32.mrf.mxu1 }
 0x3c9   : > { %1108 = vrot.lane.b32.xlu1 %v1106_v13, %s2393_s14  ;;  %s2910_s14 = sld [smem:[#allocation21_spill]] }
 0x3ca   : > { %v1272_v17 = vpop.f32.mrf.mxu1 }
 0x3cb   : > { %v1277_v18 = vmul.f32 %v2200_v16, %v1272_v17  ;;  %v1941_v16 = vld [vmem:[%s2916_s27] ss:$0 sm:$0xff] }
 0x3cc   : > { %v2043_v19 = vpop.f32.mrf.mxu1 }
 0x3cd   : > { %1279 = vrot.lane.b32.xlu0 %v1277_v18, %s2394_s15  ;;  %v1942_v18 = vld [vmem:[%s2917_s19] ss:$0 sm:$0xff]  ;;  %s2396_s15 = smov [#allocation9]  }
 0x3ce   : > { %v1443_v21 = vpop.f32.mrf.mxu1 }
 0x3cf   : > { %v1448_v22 = vmul.f32 %v2202_v20, %v1443_v21  ;;  %v1935_v51 = vld [vmem:[%s2910_s14] ss:$0 sm:$0xff] }
 0x3d0   : > { %v2053_v23 = vpop.f32.mrf.mxu1 }
 0x3d1   : > { %1450 = vrot.lane.b32.xlu1 %v1448_v22, %s2395_s28  ;;  %s2293_s28 = sshll.u32 %s2396_s15, 4  ;;  %s2294_s28 = int_to_ptr.vmem [resolvable:$false] %s2293_s28 }
 0x3d2   : > { %s2295_s13 = scalar_lea.vmem %s2294_s28, 256  ;;  %p2296_p10 = scmp.lt.s32.totalorder %s1792_s11, %s2294_s28 }
 0x3d3   : > { %p2297_p5 = scmp.lt.s32.totalorder %s2295_s13, %s2289_s29 }
 0x3d5   : > { %p2298_p7 = por %p2297_p5, %p2296_p10 }
 0x3d7   : > { %p2299_p3 = pnand %p2298_p7, %p2292_p8 }
 0x43b   : > { %v1109_v24 = vpop.permute.xlu1 %1108 }
 0x43c   : > { %1112 = vst.msk [vmem:[#allocation2] sm:$0xff] %vm1111_vm3, %v1109_v24 }
 0x43f   : > { %v1280_v25 = vpop.permute.xlu0 %1279 }
 0x440   : > { %1283 = vst.msk [vmem:[#allocation2] sm:$0xff] %vm1282_vm4, %v1280_v25 }
 0x443   : > { %v1451_v26 = vpop.permute.xlu1 %1450 }
 0x444   : > { %1454 = vst.msk [vmem:[#allocation2] sm:$0xff] %vm1453_vm5, %v1451_v26 }
 0x44b   : > { %v1455_v27 = vld [vmem:[#allocation2] sm:$0xff] }
 0x44c   : > { %2063 = vmatmul.mubr.msk.f32.vlgmr.msra.gmra.mxu0 %vm618_vm1, %v1455_v27 }
 0x44d   : > { %2092 = vmatprep.mubr.msk.f32.mxu0 %vm2385_vm0, %v2384_v0  ;;  %2077 = vmatpush3.msra.mxu0 %v1663_v42 }
 0x44e   : > { %2078 = vmatprep.subr.mxu0 %v2384_v0 }
 0x44f   : > { %2079 = vmatpush3.msra.mxu0 %v1662_v43 }
 0x450   : > { %2080 = vmatprep.subr.mxu0 %v2384_v0 }
 0x451   : > { %2081 = vmatpush3.msra.mxu0 %v1661_v44 }
 0x452   : > { %2082 = vmatprep.subr.mxu0 %v2384_v0 }
 0x453   : > { %2083 = vmatpush3.msra.mxu0 %v1660_v45 }
 0x454   : > { %2084 = vmatprep.subr.mxu0 %v2384_v0 }
 0x455   : > { %2085 = vmatpush3.msra.mxu0 %v1659_v46 }
 0x456   : > { %2086 = vmatprep.subr.mxu0 %v2384_v0 }
 0x457   : > { %2087 = vmatpush3.msra.mxu0 %v1658_v56 }
 0x458   : > { %2088 = vmatprep.subr.mxu0 %v2384_v0 }
 0x459   : > { %2089 = vmatpush3.msra.mxu0 %v1657_v57 }
 0x45a   : > { %2090 = vmatprep.subr.mxu0 %v2384_v0 }
 0x45b   : > { %2091 = vmatpush3.msra.mxu0 %v1656_v58 }
 0x50c   : > { %v1536_v29 = vpop.f32.mrf.mxu0 }
 0x50d   : > { %v1537_v30 = vadd.f32 %v1933_v28, %v1536_v29 }
 0x50e   : > { %v2064_v31 = vpop.f32.mrf.mxu0 }
 0x50f   : > { %v1540_v32 = vadd.f32 %v1537_v30, %v2649_v5  ;;  %v1571_v5 = vld [vmem:[#allocation8] sm:$0xff] }
 0x510   : > { %2072 = vmatpush3.msra.mxu1 %v1571_v5 }
 0x511   : > { %v1543_v33 = vsel %vm618_vm1, %v1540_v32, 0.0 }
 0x512   : > { %1544 = vadd.xlane.f32.xlu1 %v1543_v33 }
 0x59b   : > { %v1545_v34 = vpop.xlane.xlu1 %1544 }
 0x59c   : > { %v1547_v35 = vmul.f32 0.03125, %v1545_v34 }
 0x59e   : > { %v1548_v36 = vsub.f32 %v1540_v32, %v1547_v35 }
 0x5a0   : > { %v1549_v37 = vmul.f32 %v1548_v36, %v1548_v36 }
 0x5a2   : > { %v1550_v38 = vsel %vm618_vm1, %v1549_v37, 0.0 }
 0x5a3   : > { %1551 = vadd.xlane.f32.xlu0 %v1550_v38 }
 0x62c   : > { %v1552_v47 = vpop.xlane.xlu0 %1551 }
 0x62d   : > { %v1553_v48 = vmul.f32 0.03125, %v1552_v47 }
 0x62f   : > { %v1554_v49 = vadd.f32 1e-05, %v1553_v48 }
 0x631   : > { %2203 = vrsqrt.f32 %v1554_v49 }
 0x63e   : > { %v2204_v50 = vpop.eup %2203 }
 0x63f   : > { %v1556_v52 = vmul.f32 %v2204_v50, %v1548_v36 }
 0x641   : > { %v1563_v54 = vmul.f32 %v1935_v51, %v1556_v52 }
 0x643   : > { %v1570_v55 = vadd.f32 %v1936_v53, %v1563_v54 }
 0x645   : > { %2074 = vmatmul.mubr.msk.f32.vlgmr.msra.gmra.mxu1 %vm618_vm1, %v1570_v55 }
 0x705   : > { %v1651_v60 = vpop.f32.mrf.mxu1 }
 0x706   : > { %v1652_v61 = vadd.f32 %v1937_v59, %v1651_v60 }
 0x707   : > { %v2075_v62 = vpop.f32.mrf.mxu1 }
 0x708   : > { %v1655_v63 = vmax.f32 %v1652_v61, 0.0 }
 0x70a   : > { %2093 = vmatmul.mubr.msk.f32.vlgmr.msra.gmra.mxu0 %vm1671_vm6, %v1655_v63 }
 0x7ca   : > { %v1741_v2 = vpop.f32.mrf.mxu0 }
 0x7cb   : > { %v1742_v3 = vadd.f32 %v1939_v1, %v1741_v2 }
 0x7cc   : > { %v2094_v4 = vpop.f32.mrf.mxu0 }
 0x7cd   : > { %v1745_v6 = vadd.f32 %v1742_v3, %v1570_v55 }
 0x7cf   : > { %v1748_v0 = vsel %vm618_vm1, %v1745_v6, 0.0 }
 0x7d0   : > { %1749 = vadd.xlane.f32.xlu0 %v1748_v0 }
 0x859   : > { %v1750_v7 = vpop.xlane.xlu0 %1749 }
 0x85a   : > { %v1751_v8 = vmul.f32 0.03125, %v1750_v7 }
 0x85c   : > { %v1752_v9 = vsub.f32 %v1745_v6, %v1751_v8 }
 0x85e   : > { %v1753_v10 = vmul.f32 %v1752_v9, %v1752_v9 }
 0x860   : > { %v1754_v11 = vsel %vm618_vm1, %v1753_v10, 0.0 }
 0x861   : > { %1755 = vadd.xlane.f32.xlu1 %v1754_v11 }
 0x8ea   : > { %v1756_v12 = vpop.xlane.xlu1 %1755 }
 0x8eb   : > { %v1757_v13 = vmul.f32 0.03125, %v1756_v12 }
 0x8ed   : > { %v1758_v14 = vadd.f32 1e-05, %v1757_v13 }
 0x8ef   : > { %2205 = vrsqrt.f32 %v1758_v14 }
 0x8fc   : > { %v2206_v15 = vpop.eup %2205 }
 0x8fd   : > { %v1760_v17 = vmul.f32 %v2206_v15, %v1752_v9 }
 0x8ff   : > { %v1767_v19 = vmul.f32 %v1941_v16, %v1760_v17 }
 0x901   : > { %v1774_v20 = vadd.f32 %v1942_v18, %v1767_v19 }
 0x903   : > { %1775 = vst.msk [vmem:[%s604_s17] sm:$0xff] %vm618_vm1, %v1774_v20 }
 0x904   : > { %2302 = shalt.err (!%p2299_p3)
}
 0x905   : > { %s2303_s16 = scalar_lea.hbm %s1789_s8, 128  ;;  %s2307_s24 = scalar_lea.hbm %s2918_s30, 256 }
 0x906   : > { %p2304_p2 = scmp.ne.s32.totalorder %s1789_s8, %s2303_s16  ;;  %p2308_p12 = scmp.lt.s32.totalorder %s1789_s8, %s2918_s30 }
 0x907   : > { %p2309_p13 = scmp.lt.s32.totalorder %s2307_s24, %s2303_s16 }
 0x908   : > { %p2305_p6 = pnand %p2304_p2, %p2565_p0 }
 0x909   : > { %p2310_p11 = por %p2309_p13, %p2308_p12 }
 0x90a   : > { %p2306_p9 = pneg %p2305_p6 }
 0x90c   : > { %p2311_p1 = pnand %p2310_p11, %p2306_p9 }
 0x90e   : > { %2314 = shalt.err (!%p2311_p1)
}
 0x90f   : > { %2103 = dma.vmem_to_hbm [thread:$0]  (%p2565_p0), %s1792_s11, 128, %s1789_s8, %s1777_s0  }
 0x910 PF: > { %s2919_s21 = sld [smem:[#allocation14_spill]]  ;;  %p2922_p8 = scmp.ge.s32.totalorder %s2377_s26, 2 }
 0x911   : > { %s2920_s17 = sld [smem:[#allocation17_spill]] }
 0x916   : > { %s1803_s10 = sand.u32 1, %s2919_s21  }
 0x917   : > { %p2921_p4 = scmp.ne.s32.totalorder %s2920_s17, 0  ;;  %s1804_s25 = scalar_lea.sflag [#allocation5], %s1803_s10 }
 0x919   : > { %p2117_p10 = pnand %p2922_p8, %p2921_p4 }
 0x91b   : > { %p2118_p5 = pneg %p2117_p10 }
 0x91d   : > { %2352 = dma.done.wait (%p2118_p5), %s1804_s25, 128  }
 0x91e   : > { %2354 = vsyncadd (%p2118_p5), %s1804_s25, 4294967168  ;;  %s35_s26 = sadd.s32 1, %s2377_s26   ;;  %s2923_s24 = sld [smem:[#allocation16_spill]] }
 0x91f   : > { %p32_p7 = scmp.ge.s32.totalorder %s35_s26, 4   ;;  %s2924_s25 = sld [smem:[#allocation18_spill]] }
 0x920   : > { %s2925_s21 = smov %s2361_s22  ;;  %s2926_s22 = smov %s2365_s23 }
 0x921   : > { %s2927_s23 = smov %s2574_s18  ;;  %34 = sbr.rel (!%p32_p7) target bundleno = 18 (0x12), region = 146 }
 0x926   :  { %1809 = vsyncpa [#allocation4], 1 }
 0x927   :  { %1811 = vsyncpa [#allocation4 + $0x1], 1 }
 0x928   :  { %1812 = vsyncpa [#allocation7], 1 }
 0x929   :  { %1814 = vsyncpa [#allocation7 + $0x1], 1 }
 0x92a   :  { %1815 = vsyncpa [#allocation5], 1 }
 0x92b   :  { %1817 = vsyncpa [#allocation5 + $0x1], 1 }

</bundles_post_ra>
